<compile_context>
chip_gen: v7x
topology: tpu7x:2x2x1
jax: 0.10.0
libtpu: 0.0.40
codegen_flags: <defaults>
</compile_context>

<pallas_src>
import jax
import jax.numpy as jnp
from jax.experimental import pallas as pl
from jax.experimental.pallas import tpu as pltpu


SOFTPLUS_BETA = 100.0


def _softplus(z):
    # Overflow-free PyTorch-compatible Softplus(beta=100):
    #   softplus(z) = max(z, 0) + log1p(exp(-|beta*z|)) / beta
    # (matches torch's thresholded form to well below f32 tolerance)
    bz = SOFTPLUS_BETA * z
    return jnp.maximum(z, 0.0) + jnp.log1p(jnp.exp(-jnp.abs(bz))) / SOFTPLUS_BETA


def _make_mlp_kernel(num_linear):
    """Fused MLP kernel: refs = (xT, w0, b0, w1, b1, ..., outT).

    xT block:  (d_in, batch_tile)   -- batch in the lane dim
    w_l:       (out_l, in_l)        -- torch layout, resident in VMEM
    b_l:       (out_l, 1)           -- broadcast along lanes
    outT block:(d_out, batch_tile)  -- lane-dense stores
    """

    def kernel(*refs):
        x_ref = refs[0]
        o_ref = refs[-1]
        param_refs = refs[1:-1]

        h = x_ref[...].astype(jnp.float32)          # (d_in, bt)
        for l in range(num_linear):
            w = param_refs[2 * l][...]              # (out_l, in_l)
            b = param_refs[2 * l + 1][...]          # (out_l, 1)
            h = jnp.dot(w, h, preferred_element_type=jnp.float32) + b
            if l != num_linear - 1:
                h = _softplus(h)
            # last layer: last_act_fun is None -> identity
        o_ref[...] = h.astype(o_ref.dtype)

    return kernel


def lin_module_forward(x, params, *, batch_tile=512):
    """Run the fused MLP Pallas kernel.

    x:       (B, d_in) float32
    params:  list of (W, b) with W in torch layout (out_l, in_l), b shape (out_l, 1)
    returns: (B, d_out) float32
    """
    B, d_in = x.shape
    num_linear = len(params)
    d_out = params[-1][0].shape[0]

    assert batch_tile % 128 == 0, "batch_tile must be a multiple of 128 (lane dim)"

    n_steps = pl.cdiv(B, batch_tile)
    B_pad = n_steps * batch_tile

    # Transpose once in the wrapper (batch -> lane dim) and zero-pad the tail.
    xT = x.T
    if B_pad != B:
        xT = jnp.pad(xT, ((0, 0), (0, B_pad - B)))

    flat_params = []
    # x block streams along the grid; weights/biases are resident (constant index_map).
    in_specs = [pl.BlockSpec((d_in, batch_tile), lambda i: (0, i))]
    for (w, b) in params:
        flat_params.extend([w, b])
        in_specs.append(pl.BlockSpec(w.shape, lambda i: (0, 0)))
        in_specs.append(pl.BlockSpec(b.shape, lambda i: (0, 0)))

    out_specs = pl.BlockSpec((d_out, batch_tile), lambda i: (0, i))

    kernel = _make_mlp_kernel(num_linear)

    outT = pl.pallas_call(
        kernel,
        out_shape=jax.ShapeDtypeStruct((d_out, B_pad), x.dtype),
        grid_spec=pltpu.PrefetchScalarGridSpec(
            num_scalar_prefetch=0,
            grid=(n_steps,),
            in_specs=in_specs,
            out_specs=out_specs,
        ),
        compiler_params=pltpu.CompilerParams(
            dimension_semantics=("parallel",),   # shards grid steps across TCs on v7x
        ),
    )(xT, *flat_params)

    # Back to the module's (B, d_out) convention, dropping any padded columns.
    return outT[:, :B].T


def init_params(key, d_in, d_out, dims):
    """Deterministic init mirroring lin_module.__init__ with weight_xavier=True:
    xavier_normal_ weights, zero bias.  Weights kept in torch layout (out, in)."""
    all_dims = [d_in] + list(dims) + [d_out]
    params = []
    for l in range(len(all_dims) - 1):
        fan_in, fan_out = all_dims[l], all_dims[l + 1]
        key, sub = jax.random.split(key)
        std = jnp.sqrt(2.0 / (fan_in + fan_out))  # xavier_normal gain=1
        w = jax.random.normal(sub, (fan_out, fan_in), dtype=jnp.float32) * std
        b = jnp.zeros((fan_out, 1), dtype=jnp.float32)
        params.append((w, b))
    return params


def reference_forward(x, params):
    """Pure-JAX reference matching the PyTorch forward (batch-major layout)."""
    h = x
    num_linear = len(params)
    for l, (w, b) in enumerate(params):
        h = h @ w.T + b.T
        if l != num_linear - 1:
            h = _softplus(h)
    return h


if __name__ == "__main__":
    # Small shapes consistent with the module: d_in=8, hidden dims [32, 32], d_out=4.
    # batch=300 exercises both a multi-step parallel grid (3 steps of 128) and the
    # padded tail path.
    d_in, d_out, dims = 8, 4, [32, 32]
    batch = 300

    key = jax.random.PRNGKey(0)
    key, kx = jax.random.split(key)
    x = jax.random.normal(kx, (batch, d_in), dtype=jnp.float32)

    params = init_params(key, d_in, d_out, dims)

    out = lin_module_forward(x, params, batch_tile=128)
    out = jax.block_until_ready(out)

    ref = reference_forward(x, params)
    assert out.shape == (batch, d_out)
    assert jnp.allclose(out, ref, atol=1e-4, rtol=1e-4), "mismatch vs reference"

    print("KERNEL_OK")
</pallas_src>

<mosaic_0001>
module attributes {stable_mosaic.version = 11 : i64} {
  func.func @kernel(%arg0: i32, %arg1: memref<8x128xf32, #tpu.memory_space<vmem>>, %arg2: memref<32x8xf32, #tpu.memory_space<vmem>>, %arg3: memref<32x1xf32, #tpu.memory_space<vmem>>, %arg4: memref<32x32xf32, #tpu.memory_space<vmem>>, %arg5: memref<32x1xf32, #tpu.memory_space<vmem>>, %arg6: memref<4x32xf32, #tpu.memory_space<vmem>>, %arg7: memref<4x1xf32, #tpu.memory_space<vmem>>, %arg8: memref<4x128xf32, #tpu.memory_space<vmem>>) attributes {dimension_semantics = [#tpu.dimension_semantics<parallel>], iteration_bounds = array<i64: 3>, scalar_prefetch = 0 : i64, scratch_operands = 0 : i64, tpu.core_type = #tpu.core_type<tc>, window_params = [{transform_indices = @transform_0, window_bounds = array<i64: 8, 128>}, {pipeline_mode = #tpu.pipeline_mode<synchronous>, transform_indices = @transform_1, window_bounds = array<i64: 32, 8>}, {pipeline_mode = #tpu.pipeline_mode<synchronous>, transform_indices = @transform_2, window_bounds = array<i64: 32, 1>}, {pipeline_mode = #tpu.pipeline_mode<synchronous>, transform_indices = @transform_3, window_bounds = array<i64: 32, 32>}, {pipeline_mode = #tpu.pipeline_mode<synchronous>, transform_indices = @transform_4, window_bounds = array<i64: 32, 1>}, {pipeline_mode = #tpu.pipeline_mode<synchronous>, transform_indices = @transform_5, window_bounds = array<i64: 4, 32>}, {pipeline_mode = #tpu.pipeline_mode<synchronous>, transform_indices = @transform_6, window_bounds = array<i64: 4, 1>}, {transform_indices = @transform_7, window_bounds = array<i64: 4, 128>}]} {
    %c0 = arith.constant 0 : index
    %c0_0 = arith.constant 0 : index
    %0 = vector.load %arg1[%c0, %c0_0] : memref<8x128xf32, #tpu.memory_space<vmem>>, vector<8x128xf32>
    %c0_1 = arith.constant 0 : index
    %c0_2 = arith.constant 0 : index
    %1 = vector.load %arg2[%c0_1, %c0_2] : memref<32x8xf32, #tpu.memory_space<vmem>>, vector<32x8xf32>
    %c0_3 = arith.constant 0 : index
    %c0_4 = arith.constant 0 : index
    %2 = vector.load %arg3[%c0_3, %c0_4] : memref<32x1xf32, #tpu.memory_space<vmem>>, vector<32x1xf32>
    %cst = arith.constant dense<0.000000e+00> : vector<32x128xf32>
    %3 = tpu.matmul %1, %0, %cst {dimension_numbers = #tpu.dot_dimension_numbers<[1], [0], [0], [1], [0, 0, 1, 1], [], []>} : vector<32x8xf32>, vector<8x128xf32>, vector<32x128xf32> -> vector<32x128xf32>
    %4 = vector.broadcast %2 : vector<32x1xf32> to vector<32x128xf32>
    %5 = arith.addf %3, %4 : vector<32x128xf32>
    %cst_5 = arith.constant 1.000000e+02 : f32
    %6 = vector.broadcast %cst_5 : f32 to vector<32x128xf32>
    %7 = arith.mulf %6, %5 : vector<32x128xf32>
    %cst_6 = arith.constant 0.000000e+00 : f32
    %8 = vector.broadcast %cst_6 : f32 to vector<32x128xf32>
    %9 = arith.maximumf %5, %8 : vector<32x128xf32>
    %10 = math.absf %7 : vector<32x128xf32>
    %cst_7 = arith.constant 0.000000e+00 : f32
    %11 = vector.broadcast %cst_7 : f32 to vector<32x128xf32>
    %12 = arith.subf %11, %10 : vector<32x128xf32>
    %13 = math.exp %12 : vector<32x128xf32>
    %14 = math.log1p %13 : vector<32x128xf32>
    %cst_8 = arith.constant 1.000000e+02 : f32
    %15 = vector.broadcast %cst_8 : f32 to vector<32x128xf32>
    %16 = arith.divf %14, %15 : vector<32x128xf32>
    %17 = arith.addf %9, %16 : vector<32x128xf32>
    %c0_9 = arith.constant 0 : index
    %c0_10 = arith.constant 0 : index
    %18 = vector.load %arg4[%c0_9, %c0_10] : memref<32x32xf32, #tpu.memory_space<vmem>>, vector<32x32xf32>
    %c0_11 = arith.constant 0 : index
    %c0_12 = arith.constant 0 : index
    %19 = vector.load %arg5[%c0_11, %c0_12] : memref<32x1xf32, #tpu.memory_space<vmem>>, vector<32x1xf32>
    %cst_13 = arith.constant dense<0.000000e+00> : vector<32x128xf32>
    %20 = tpu.matmul %18, %17, %cst_13 {dimension_numbers = #tpu.dot_dimension_numbers<[1], [0], [0], [1], [0, 0, 1, 1], [], []>} : vector<32x32xf32>, vector<32x128xf32>, vector<32x128xf32> -> vector<32x128xf32>
    %21 = vector.broadcast %19 : vector<32x1xf32> to vector<32x128xf32>
    %22 = arith.addf %20, %21 : vector<32x128xf32>
    %cst_14 = arith.constant 1.000000e+02 : f32
    %23 = vector.broadcast %cst_14 : f32 to vector<32x128xf32>
    %24 = arith.mulf %23, %22 : vector<32x128xf32>
    %cst_15 = arith.constant 0.000000e+00 : f32
    %25 = vector.broadcast %cst_15 : f32 to vector<32x128xf32>
    %26 = arith.maximumf %22, %25 : vector<32x128xf32>
    %27 = math.absf %24 : vector<32x128xf32>
    %cst_16 = arith.constant 0.000000e+00 : f32
    %28 = vector.broadcast %cst_16 : f32 to vector<32x128xf32>
    %29 = arith.subf %28, %27 : vector<32x128xf32>
    %30 = math.exp %29 : vector<32x128xf32>
    %31 = math.log1p %30 : vector<32x128xf32>
    %cst_17 = arith.constant 1.000000e+02 : f32
    %32 = vector.broadcast %cst_17 : f32 to vector<32x128xf32>
    %33 = arith.divf %31, %32 : vector<32x128xf32>
    %34 = arith.addf %26, %33 : vector<32x128xf32>
    %c0_18 = arith.constant 0 : index
    %c0_19 = arith.constant 0 : index
    %35 = vector.load %arg6[%c0_18, %c0_19] : memref<4x32xf32, #tpu.memory_space<vmem>>, vector<4x32xf32>
    %c0_20 = arith.constant 0 : index
    %c0_21 = arith.constant 0 : index
    %36 = vector.load %arg7[%c0_20, %c0_21] : memref<4x1xf32, #tpu.memory_space<vmem>>, vector<4x1xf32>
    %cst_22 = arith.constant dense<0.000000e+00> : vector<4x128xf32>
    %37 = tpu.matmul %35, %34, %cst_22 {dimension_numbers = #tpu.dot_dimension_numbers<[1], [0], [0], [1], [0, 0, 1, 1], [], []>} : vector<4x32xf32>, vector<32x128xf32>, vector<4x128xf32> -> vector<4x128xf32>
    %38 = vector.broadcast %36 : vector<4x1xf32> to vector<4x128xf32>
    %39 = arith.addf %37, %38 : vector<4x128xf32>
    %c0_23 = arith.constant 0 : index
    %c0_24 = arith.constant 0 : index
    %40 = vector.load %arg8[%c0_23, %c0_24] : memref<4x128xf32, #tpu.memory_space<vmem>>, vector<4x128xf32>
    tpu.vector_store %arg8[%c0_23, %c0_24], %39 {strides = array<i32>} : memref<4x128xf32, #tpu.memory_space<vmem>>, vector<4x128xf32>,
    return
  }
  func.func @transform_0(%arg0: i32) -> (i32, i32) {
    %c0_i32 = arith.constant 0 : i32
    %c0_i32_0 = arith.constant 0 : i32
    return %c0_i32, %arg0 : i32, i32
  }
  func.func @transform_1(%arg0: i32) -> (i32, i32) {
    %c0_i32 = arith.constant 0 : i32
    %c0_i32_0 = arith.constant 0 : i32
    %c0_i32_1 = arith.constant 0 : i32
    return %c0_i32, %c0_i32_0 : i32, i32
  }
  func.func @transform_2(%arg0: i32) -> (i32, i32) {
    %c0_i32 = arith.constant 0 : i32
    %c0_i32_0 = arith.constant 0 : i32
    %c0_i32_1 = arith.constant 0 : i32
    return %c0_i32, %c0_i32_0 : i32, i32
  }
  func.func @transform_3(%arg0: i32) -> (i32, i32) {
    %c0_i32 = arith.constant 0 : i32
    %c0_i32_0 = arith.constant 0 : i32
    %c0_i32_1 = arith.constant 0 : i32
    return %c0_i32, %c0_i32_0 : i32, i32
  }
  func.func @transform_4(%arg0: i32) -> (i32, i32) {
    %c0_i32 = arith.constant 0 : i32
    %c0_i32_0 = arith.constant 0 : i32
    %c0_i32_1 = arith.constant 0 : i32
    return %c0_i32, %c0_i32_0 : i32, i32
  }
  func.func @transform_5(%arg0: i32) -> (i32, i32) {
    %c0_i32 = arith.constant 0 : i32
    %c0_i32_0 = arith.constant 0 : i32
    %c0_i32_1 = arith.constant 0 : i32
    return %c0_i32, %c0_i32_0 : i32, i32
  }
  func.func @transform_6(%arg0: i32) -> (i32, i32) {
    %c0_i32 = arith.constant 0 : i32
    %c0_i32_0 = arith.constant 0 : i32
    %c0_i32_1 = arith.constant 0 : i32
    return %c0_i32, %c0_i32_0 : i32, i32
  }
  func.func @transform_7(%arg0: i32) -> (i32, i32) {
    %c0_i32 = arith.constant 0 : i32
    %c0_i32_0 = arith.constant 0 : i32
    return %c0_i32, %arg0 : i32, i32
  }
}

</mosaic_0001>

<bundles_post_ra>
// kernel: tpu_custom_call.1
= control target key start
LH: loop header
LB: loop body
LE: loop exit
PB: predicated region body
PF: predicated region fallthrough
CT: control target
= control target key end

     0   :  { %12 = vsyncpa [#allocation3], 0  ;;  %s1285_s0 = inlined_call_operand.vmem [shape: f32[8,384], index: 0, kind: input, shape index: {}]   ;;  %s1286_s1 = inlined_call_operand.vmem [shape: f32[32,8], index: 1, kind: input, shape index: {}]   ;;  %s1287_s2 = inlined_call_operand.vmem [shape: f32[32,1], index: 2, kind: input, shape index: {}]   ;;  %s1288_s3 = inlined_call_operand.vmem [shape: f32[32,32], index: 3, kind: input, shape index: {}]   ;;  %s1289_s4 = inlined_call_operand.vmem [shape: f32[32,1], index: 4, kind: input, shape index: {}]   ;;  %s1290_s5 = inlined_call_operand.vmem [shape: f32[4,32], index: 5, kind: input, shape index: {}]   ;;  %s1291_s6 = inlined_call_operand.vmem [shape: f32[4,1], index: 6, kind: input, shape index: {}]   ;;  %s1292_s7 = inlined_call_operand.hbm [shape: f32[4,384], index: 7, kind: output, shape index: {}]  }
   0x1   :  { %14 = vsyncpa [#allocation3 + $0x1], 0  ;;  %s1088_s24 = smov 0   ;;  %s1090_s25 = smov 0  }
   0x2   :  { %s1092_s26 = smov 0   ;;  %s1094_s27 = smov 0  }
   0x3 LB: > { %s1109_s28 = sadd.s32 4294967295, %s1041_s27   ;;  %s818_s29 = sadd.s32 4294967294, %s1041_s27   ;;  %s1041_s27 = sphi %s1094_s27, %s1298_s27   ;;  %s1037_s26 = sphi %s1092_s26, %s1297_s26   ;;  %s1033_s25 = sphi %s1090_s25, %s1296_s25   ;;  %s1029_s24 = sphi %s1088_s24, %s1295_s24  }
   0x4   : > { %s1113_s30 = sadd.s32 1, %s1041_s27   ;;  %s179_s8 = sadd.s32 1, %s1037_s26 }
   0x5   : > { %s176_s9 = ssub.s32 %s1041_s27, %s1113_s30  ;;  %p189_p0 = scmp.ne.s32.totalorder %s1037_s26, %s1033_s25 }
   0x6   : > { %p177_p1 = scmp.eq.s32.totalorder %s176_s9, 0  ;;  %p190_p2 = scmp.eq.s32.totalorder %s1109_s28, 2 }
   0x7   : > { %p195_p3 = scmp.ne.s32.totalorder %s1033_s25, %s1029_s24  ;;  %p196_p4 = scmp.eq.s32.totalorder %s818_s29, 2 }
   0x8   : > { %s1124_s10 = scalar_select %p177_p1, %s1037_s26, %s179_s8  }
   0x9   : > { %p1126_p5 = por %p190_p2, %p189_p0  ;;  %p1130_p6 = por %p196_p4, %p195_p3 }
   0xa   : > { %p821_p7 = scmp.ge.s32.totalorder %s1041_s27, 1  ;;  %p239_p8 = scmp.lt.s32.totalorder %s1041_s27, 4 }
   0xc   : > { %p240_p9 = pnand %p821_p7, %p239_p8 }
   0xd   : > { %p270_p10 = scmp.lt.s32.totalorder (!%p240_p9), %s1109_s28, 2  ;;  %v275_v0 = vld [vmem:[%s1286_s1] sm:$0xff] (!%p240_p9)  ;;  %vm303_vm0 = vcmask (!%p240_p9), 64512   ;;  %v1043_v1 = vmov (!%p240_p9), 0   ;;  %v281_v3 = vld [vmem:[%s1287_s2 + $0x10] sm:$0xff] (!%p240_p9)  ;;  %v280_v4 = vld [vmem:[%s1287_s2 + $0x8] sm:$0xff] (!%p240_p9) }
   0xe   : > { %243 = sbr.rel (%p240_p9) target bundleno = 783 (0x30f), region = 48  ;;  %857 = vmatprep.mubr.msk.f32.mxu0 (!%p240_p9), %vm303_vm0, %v275_v0  ;;  %945 = vset.pattern.permute.xlu0 (!%p240_p9), %v1043_v1  ;;  %v279_v2 = vld [vmem:[%s1287_s2] sm:$0xff] (!%p240_p9)  ;;  %v282_v5 = vld [vmem:[%s1287_s2 + $0x18] sm:$0xff] (!%p240_p9)  ;;  %v276_v7 = vld [vmem:[%s1286_s1 + $0x8] sm:$0xff] (!%p240_p9)  ;;  %vm498_vm1 = vcmask (!%p240_p9), 261120   ;;  %vm1045_vm6 = vmmov (!%p240_p9), 0  }
   0xf   : > { %285 = vperm.xlu0 (!%p240_p9), %945, %v279_v2   ;;  %946 = vset.pattern.permute.xlu1 (!%p240_p9), %v1043_v1  ;;  %v277_v8 = vld [vmem:[%s1286_s1 + $0x10] sm:$0xff] (!%p240_p9)  ;;  %v474_v9 = vld [vmem:[%s1289_s4] sm:$0xff] (!%p240_p9)  ;;  %v475_v10 = vld [vmem:[%s1289_s4 + $0x8] sm:$0xff] (!%p240_p9)  ;;  %s267_s9 = sand.u32 (!%p240_p9), 1, %s1033_s25   ;;  %s834_s14 = sshll.u32 (!%p240_p9), %s1109_s28, 6 }
  0x10   : > { %295 = vperm.xlu1 (!%p240_p9), %946, %v281_v3   ;;  %v278_v11 = vld [vmem:[%s1286_s1 + $0x18] sm:$0xff] (!%p240_p9)  ;;  %v476_v12 = vld [vmem:[%s1289_s4 + $0x10] sm:$0xff] (!%p240_p9)  ;;  %v665_v14 = vld [vmem:[%s1291_s6] sm:$0xf] (!%p240_p9)  ;;  %s1243_s19 = scalar_lea.hbm (!%p240_p9), %s1292_s7, %s834_s14  ;;  %s746_s20 = scalar_lea.sflag (!%p240_p9), [#allocation3], %s267_s9 }
  0x11   : > { %v477_v13 = vld [vmem:[%s1289_s4 + $0x18] sm:$0xff] (!%p240_p9)  ;;  %v470_v15 = vld [vmem:[%s1288_s3] sm:$0xff] (!%p240_p9) }
  0x12   : > { %871 = vmatprep.mubr.msk.f32.mxu1 (!%p240_p9), %vm498_vm1, %v470_v15 }
  0x13   : > { %290 = vperm.xlu0 (!%p240_p9), %945, %v280_v4  }
  0x14   : > { %300 = vperm.xlu1 (!%p240_p9), %946, %v282_v5  }
  0x15   : > { %s271_s17 = scalar_select %p270_p10, %s1109_s28, 2 }
  0x16   : > { %s1047_s28 = smov [#allocation2]  }
  0x17   : > { %s823_s22 = sshll.u32 %s271_s17, 3  ;;  %480 = vperm.xlu0 %945, %v474_v9  }
  0x18   : > { %s273_s13 = scalar_lea.vmem %s1285_s0, %s823_s22  ;;  %485 = vperm.xlu1 %946, %v475_v10   ;;  %s983_s22 = sshll.u32 %s1047_s28, 4  ;;  %s984_s22 = int_to_ptr.vmem [resolvable:$false] %s983_s22 }
  0x19   : > { %v274_v6 = vld [vmem:[%s273_s13] sm:$0xff]  ;;  %s822_s13 = sshll.u32 %s267_s9, 2  ;;  %s985_s23 = scalar_lea.vmem %s984_s22, 128 }
  0x1a   : > { %855 = vmatprep.subr.mxu0 %v274_v6  ;;  %s269_s15 = scalar_lea.vmem [#allocation2], %s822_s13 }
  0x1b   : > { %856 = vmatpush3.msra.mxu0 %v274_v6  ;;  %490 = vperm.xlu0 %945, %v476_v12   ;;  %s759_s16 = sshll.u32 %s269_s15, 4  ;;  %s1245_s16 = int_to_ptr.vmem [resolvable:$true] %s759_s16 }
  0x1c   : > { %858 = vmatmul.mubr.msk.f32.vlgmr.msra.gmra.mrb[0].mxu0 %vm303_vm0, %v276_v7  ;;  %495 = vperm.xlu1 %946, %v477_v13   ;;  %s979_s21 = scalar_lea.vmem %s1245_s16, 64  ;;  %p986_p0 = scmp.lt.s32.totalorder %s1245_s16, %s984_s22 }
  0x1d   : > { %860 = vmatprep.mubr.msk.f32.mxu0 %vm303_vm0, %v277_v8  ;;  %p980_p11 = scmp.ne.s32.totalorder %s1245_s16, %s979_s21  ;;  %p987_p1 = scmp.lt.s32.totalorder %s985_s23, %s979_s21 }
  0x1f   : > { %668 = vperm.xlu0 %945, %v665_v14   ;;  %p981_p12 = pnand %p980_p11, %p1126_p5  ;;  %p988_p2 = por %p987_p1, %p986_p0 }
  0x20   : > { %861 = vmatmul.mubr.msk.f32.gmra.mrb[2].mxu0 %vm303_vm0, %v278_v11 }
  0x21   : > { %p982_p13 = pneg %p981_p12 }
  0x23   : > { %p989_p3 = pnand %p988_p2, %p982_p13 }
  0x8e   : > { %v286_v16 = vpop.permute.xlu0 %285 }
  0x8f   : > { %v296_v17 = vpop.permute.xlu1 %295 }
  0x92   : > { %v291_v18 = vpop.permute.xlu0 %290 }
  0x93   : > { %v301_v24 = vpop.permute.xlu1 %300 }
  0xef   : > { %v859_v19 = vpop.f32.mrb[0].mxu0 }
  0xf0   : > { %v1188_v20 = vadd.f32 %v859_v19, %v291_v18  ;;  %v382_v21 = vpop.f32.mrb[1].mxu0 }
  0xf1   : > { %v1190_v22 = vadd.f32 %v382_v21, %v286_v16 }
  0xf2   : > { %v402_v23 = vmul.f32 100.0, %v1188_v20  ;;  %v406_v8 = vmax.f32 %v1188_v20, 0.0 }
  0xf3   : > { %v401_v25 = vmul.f32 100.0, %v1190_v22  ;;  %v862_v26 = vpop.f32.mrb[2].mxu0  ;;  %v405_v12 = vmax.f32 %v1190_v22, 0.0 }
  0xf4   : > { %v410_v27 = vand.u32 2147483647, %v402_v23  ;;  %v1194_v28 = vadd.f32 %v862_v26, %v301_v24  ;;  %v392_v29 = vpop.f32.mrb[3].mxu0 }
  0xf5   : > { %v409_v30 = vand.u32 2147483647, %v401_v25  ;;  %v1196_v31 = vadd.f32 %v392_v29, %v296_v17 }
  0xf6   : > { %v414_v32 = vsub.f32 0.0, %v410_v27  ;;  %v404_v33 = vmul.f32 100.0, %v1194_v28  ;;  %v408_v23 = vmax.f32 %v1194_v28, 0.0  ;;  %v472_v28 = vld [vmem:[%s1288_s3 + $0x10] sm:$0xff] }
  0xf7   : > { %v413_v34 = vsub.f32 0.0, %v409_v30  ;;  %v403_v35 = vmul.f32 100.0, %v1196_v31  ;;  %v407_v20 = vmax.f32 %v1196_v31, 0.0  ;;  %v473_v31 = vld [vmem:[%s1288_s3 + $0x18] sm:$0xff] }
  0xf8   : > { %v419_v36 = vmul.f32 1.442695, %v414_v32  ;;  %v412_v37 = vand.u32 2147483647, %v404_v33  ;;  %v471_v32 = vld [vmem:[%s1288_s3 + $0x8] sm:$0xff]  ;;  %v1044_v33 = vmov 0.0|0.0  }
  0xf9   : > { %v417_v38 = vmul.f32 1.442695, %v413_v34  ;;  %v411_v39 = vand.u32 2147483647, %v403_v35  ;;  %896 = vmatprep.subr.bf16.mxu0 %v1044_v33  ;;  %v1046_v34 = vmov 0.0   ;;  %v486_v35 = vpop.permute.xlu1 %485 }
  0xfa   : > { %947 = vpow2.f32 %v419_v36  ;;  %v416_v40 = vsub.f32 0.0, %v412_v37  ;;  %885 = vmatprep.mubr.msk.f32.mxu0 %vm1045_vm6, %v1046_v34  ;;  %v481_v36 = vpop.permute.xlu0 %480 }
  0xfb   : > { %949 = vpow2.f32 %v417_v38  ;;  %v415_v41 = vsub.f32 0.0, %v411_v39 }
  0xfc   : > { %v423_v42 = vmul.f32 1.442695, %v416_v40 }
  0xfd   : > { %v421_v43 = vmul.f32 1.442695, %v415_v41 }
  0xfe   : > { %951 = vpow2.f32 %v423_v42  ;;  %v496_v42 = vpop.permute.xlu1 %495 }
  0xff   : > { %953 = vpow2.f32 %v421_v43 }
 0x104   : > { %v948_v44 = vpop.eup %947 }
 0x105   : > { %v950_v45 = vpop.eup %949  ;;  %v434_v46 = vadd.f32 1.0, %v948_v44  ;;  %v437_v52 = vmul.f32 -0.5, %v948_v44  ;;  %v440_v56 = vand.u32 2147483647, %v948_v44 }
 0x106   : > { %v425_v47 = vadd.f32 1.0, %v950_v45  ;;  %v428_v53 = vmul.f32 -0.5, %v950_v45  ;;  %v431_v59 = vand.u32 2147483647, %v950_v45 }
 0x107   : > { %955 = vlog2.f32 %v434_v46  ;;  %v438_v55 = vadd.f32 1.0, %v437_v52  ;;  %vm441_vm2 = vcmp.lt.f32.partialorder %v440_v56, 0.0004427343 }
 0x108   : > { %v952_v48 = vpop.eup %951  ;;  %957 = vlog2.f32 %v425_v47  ;;  %v429_v58 = vadd.f32 1.0, %v428_v53  ;;  %vm432_vm3 = vcmp.lt.f32.partialorder %v431_v59, 0.0004427343 }
 0x109   : > { %v954_v49 = vpop.eup %953  ;;  %v452_v50 = vadd.f32 1.0, %v952_v48  ;;  %v455_v54 = vmul.f32 -0.5, %v952_v48  ;;  %v439_v0 = vmul.f32 %v948_v44, %v438_v55  ;;  %v458_v1 = vand.u32 2147483647, %v952_v48 }
 0x10a   : > { %v443_v51 = vadd.f32 1.0, %v954_v49  ;;  %v446_v57 = vmul.f32 -0.5, %v954_v49  ;;  %v430_v4 = vmul.f32 %v950_v45, %v429_v58  ;;  %v449_v5 = vand.u32 2147483647, %v954_v49  ;;  %v491_v45 = vpop.permute.xlu0 %490 }
 0x10b   : > { %959 = vlog2.f32 %v452_v50  ;;  %v456_v62 = vadd.f32 1.0, %v455_v54  ;;  %vm459_vm4 = vcmp.lt.f32.partialorder %v458_v1, 0.0004427343 }
 0x10c   : > { %961 = vlog2.f32 %v443_v51  ;;  %v447_v2 = vadd.f32 1.0, %v446_v57  ;;  %vm450_vm5 = vcmp.lt.f32.partialorder %v449_v5, 0.0004427343 }
 0x10d   : > { %v457_v14 = vmul.f32 %v952_v48, %v456_v62 }
 0x10e   : > { %v448_v17 = vmul.f32 %v954_v49, %v447_v2 }
 0x111   : > { %v956_v60 = vpop.eup %955 }
 0x112   : > { %v958_v61 = vpop.eup %957  ;;  %v436_v63 = vmul.f32 0.6931472, %v956_v60 }
 0x113   : > { %v427_v3 = vmul.f32 0.6931472, %v958_v61 }
 0x114   : > { %v442_v6 = vsel %vm441_vm2, %v439_v0, %v436_v63 }
 0x115   : > { %v960_v7 = vpop.eup %959  ;;  %v433_v9 = vsel %vm432_vm3, %v430_v4, %v427_v3  ;;  %v463_v10 = vmul.f32 0.01, %v442_v6 }
 0x116   : > { %v962_v11 = vpop.eup %961  ;;  %v454_v13 = vmul.f32 0.6931472, %v960_v7  ;;  %v462_v15 = vmul.f32 0.01, %v433_v9 }
 0x117   : > { %v445_v16 = vmul.f32 0.6931472, %v962_v11  ;;  %v467_v18 = vadd.f32 %v463_v10, %v406_v8 }
 0x118   : > { %v460_v19 = vsel %vm459_vm4, %v457_v14, %v454_v13  ;;  %v466_v21 = vadd.f32 %v462_v15, %v405_v12 }
 0x119   : > { %v465_v24 = vmul.f32 0.01, %v460_v19  ;;  %v451_v25 = vsel %vm450_vm5, %v448_v17, %v445_v16 }
 0x11a   : > { %v464_v26 = vmul.f32 0.01, %v451_v25  ;;  %v888_v27 = vpack.c.bf16 %v467_v18, %v466_v21 }
 0x11b   : > { %v469_v29 = vadd.f32 %v465_v24, %v408_v23 }
 0x11c   : > { %v468_v22 = vadd.f32 %v464_v26, %v407_v20  ;;  %889 = vmatprep.subr.bf16.mxu1 %v888_v27 }
 0x11d   : > { %891 = vmatpush3.bf16.msra.mxu1 %v888_v27 }
 0x11e   : > { %v892_v30 = vpack.c.bf16 %v469_v29, %v468_v22 }
 0x120   : > { %893 = vmatprep.subr.bf16.mxu1 %v892_v30 }
 0x121   : > { %895 = vmatpush3.bf16.msra.mxu1 %v892_v30 }
 0x124   : > { %872 = vmatmul.mubr.msk.f32.vlgmr.msra.gmra.mrb[0].mxu1 %vm498_vm1, %v471_v32 }
 0x125   : > { %874 = vmatprep.mubr.msk.f32.mxu1 %vm498_vm1, %v472_v28 }
 0x128   : > { %875 = vmatmul.mubr.msk.f32.gmra.mrb[2].mxu1 %vm498_vm1, %v473_v31 }
 0x1f7   : > { %v873_v37 = vpop.f32.mrb[0].mxu1 }
 0x1f8   : > { %v1217_v38 = vadd.f32 %v873_v37, %v486_v35  ;;  %v577_v39 = vpop.f32.mrb[1].mxu1 }
 0x1f9   : > { %v1219_v40 = vadd.f32 %v577_v39, %v481_v36 }
 0x1fa   : > { %v597_v41 = vmul.f32 100.0, %v1217_v38  ;;  %v601_v29 = vmax.f32 %v1217_v38, 0.0 }
 0x1fb   : > { %v596_v43 = vmul.f32 100.0, %v1219_v40  ;;  %v876_v44 = vpop.f32.mrb[2].mxu1  ;;  %v600_v28 = vmax.f32 %v1219_v40, 0.0 }
 0x1fc   : > { %v605_v46 = vand.u32 2147483647, %v597_v41  ;;  %v1223_v47 = vadd.f32 %v876_v44, %v496_v42  ;;  %v587_v48 = vpop.f32.mrb[3].mxu1 }
 0x1fd   : > { %v604_v49 = vand.u32 2147483647, %v596_v43  ;;  %v1225_v50 = vadd.f32 %v587_v48, %v491_v45 }
 0x1fe   : > { %v609_v51 = vsub.f32 0.0, %v605_v46  ;;  %v599_v52 = vmul.f32 100.0, %v1223_v47  ;;  %v603_v43 = vmax.f32 %v1223_v47, 0.0  ;;  %v669_v47 = vpop.permute.xlu0 %668 }
 0x1ff   : > { %v608_v53 = vsub.f32 0.0, %v604_v49  ;;  %v598_v54 = vmul.f32 100.0, %v1225_v50  ;;  %v602_v46 = vmax.f32 %v1225_v50, 0.0 }
 0x200   : > { %v614_v55 = vmul.f32 1.442695, %v609_v51  ;;  %v607_v56 = vand.u32 2147483647, %v599_v52  ;;  %v664_v52 = vld [vmem:[%s1290_s5] sm:$0xf] }
 0x201   : > { %v612_v57 = vmul.f32 1.442695, %v608_v53  ;;  %v606_v58 = vand.u32 2147483647, %v598_v54 }
 0x202   : > { %963 = vpow2.f32 %v614_v55  ;;  %v611_v59 = vsub.f32 0.0, %v607_v56 }
 0x203   : > { %965 = vpow2.f32 %v612_v57  ;;  %v610_v60 = vsub.f32 0.0, %v606_v58 }
 0x204   : > { %v618_v61 = vmul.f32 1.442695, %v611_v59 }
 0x205   : > { %v616_v62 = vmul.f32 1.442695, %v610_v60 }
 0x206   : > { %967 = vpow2.f32 %v618_v61 }
 0x207   : > { %969 = vpow2.f32 %v616_v62 }
 0x20c   : > { %v964_v63 = vpop.eup %963 }
 0x20d   : > { %v966_v0 = vpop.eup %965  ;;  %v629_v1 = vadd.f32 1.0, %v964_v63  ;;  %v632_v6 = vmul.f32 -0.5, %v964_v63  ;;  %v635_v10 = vand.u32 2147483647, %v964_v63 }
 0x20e   : > { %v620_v2 = vadd.f32 1.0, %v966_v0  ;;  %v623_v8 = vmul.f32 -0.5, %v966_v0  ;;  %v626_v14 = vand.u32 2147483647, %v966_v0 }
 0x20f   : > { %971 = vlog2.f32 %v629_v1  ;;  %v633_v9 = vadd.f32 1.0, %v632_v6  ;;  %vm636_vm7 = vcmp.lt.f32.partialorder %v635_v10, 0.0004427343 }
 0x210   : > { %v968_v3 = vpop.eup %967  ;;  %973 = vlog2.f32 %v620_v2  ;;  %v624_v12 = vadd.f32 1.0, %v623_v8  ;;  %vm627_vm8 = vcmp.lt.f32.partialorder %v626_v14, 0.0004427343 }
 0x211   : > { %v970_v4 = vpop.eup %969  ;;  %v647_v5 = vadd.f32 1.0, %v968_v3  ;;  %v650_v11 = vmul.f32 -0.5, %v968_v3  ;;  %v634_v18 = vmul.f32 %v964_v63, %v633_v9  ;;  %v653_v24 = vand.u32 2147483647, %v968_v3 }
 0x212   : > { %v638_v7 = vadd.f32 1.0, %v970_v4  ;;  %v641_v13 = vmul.f32 -0.5, %v970_v4  ;;  %v625_v23 = vmul.f32 %v966_v0, %v624_v12  ;;  %v644_v26 = vand.u32 2147483647, %v970_v4 }
 0x213   : > { %975 = vlog2.f32 %v647_v5  ;;  %v651_v19 = vadd.f32 1.0, %v650_v11  ;;  %vm654_vm9 = vcmp.lt.f32.partialorder %v653_v24, 0.0004427343 }
 0x214   : > { %977 = vlog2.f32 %v638_v7  ;;  %v642_v25 = vadd.f32 1.0, %v641_v13  ;;  %vm645_vm10 = vcmp.lt.f32.partialorder %v644_v26, 0.0004427343 }
 0x215   : > { %v652_v35 = vmul.f32 %v968_v3, %v651_v19 }
 0x216   : > { %v643_v39 = vmul.f32 %v970_v4, %v642_v25 }
 0x219   : > { %v972_v15 = vpop.eup %971 }
 0x21a   : > { %v974_v16 = vpop.eup %973  ;;  %v631_v17 = vmul.f32 0.6931472, %v972_v15 }
 0x21b   : > { %v622_v21 = vmul.f32 0.6931472, %v974_v16 }
 0x21c   : > { %v637_v20 = vsel %vm636_vm7, %v634_v18, %v631_v17 }
 0x21d   : > { %v976_v27 = vpop.eup %975  ;;  %v657_v22 = vmul.f32 0.01, %v637_v20  ;;  %v628_v30 = vsel %vm627_vm8, %v625_v23, %v622_v21 }
 0x21e   : > { %v978_v32 = vpop.eup %977  ;;  %v656_v31 = vmul.f32 0.01, %v628_v30  ;;  %v649_v34 = vmul.f32 0.6931472, %v976_v27 }
 0x21f   : > { %v661_v36 = vadd.f32 %v657_v22, %v601_v29  ;;  %v640_v37 = vmul.f32 0.6931472, %v978_v32 }
 0x220   : > { %v660_v41 = vadd.f32 %v656_v31, %v600_v28  ;;  %v655_v42 = vsel %vm654_vm9, %v652_v35, %v649_v34 }
 0x221   : > { %v659_v38 = vmul.f32 0.01, %v655_v42  ;;  %v646_v44 = vsel %vm645_vm10, %v643_v39, %v640_v37 }
 0x222   : > { %v897_v45 = vpack.c.bf16 %v661_v36, %v660_v41  ;;  %v658_v40 = vmul.f32 0.01, %v646_v44 }
 0x223   : > { %v663_v48 = vadd.f32 %v659_v38, %v603_v43 }
 0x224   : > { %v662_v49 = vadd.f32 %v658_v40, %v602_v46  ;;  %898 = vmatpush3.bf16.msra.mxu0 %v897_v45 }
 0x225   : > { %899 = vmatprep.subr.bf16.mxu0 %v1044_v33 }
 0x226   : > { %v900_v51 = vpack.c.bf16 %v663_v48, %v662_v49 }
 0x228   : > { %901 = vmatpush3.bf16.msra.mxu0 %v900_v51 }
 0x22b   : > { %886 = vmatmul.mubr.msk.f32.vlgmr.msra.gmra.mrb[4].mxu0 %vm498_vm1, %v664_v52 }
 0x2fe   : > { %v740_v50 = vpop.f32.mrb[4].mxu0 }
 0x2ff   : > { %v741_v53 = vadd.f32 %v740_v50, %v669_v47  ;;  %v887_v54 = vpop.f32.mrb[5].mxu0 }
 0x301   : > { %744 = vst [vmem:[%s269_s15] sm:$0xf] %v741_v53 }
 0x302   : > { %992 = shalt.err (!%p989_p3)
}
 0x303   : > { %s993_s29 = scalar_lea.hbm %s1243_s19, 64  ;;  %s997_s13 = scalar_lea.hbm %s1292_s7, 192 }
 0x304   : > { %p994_p4 = scmp.ne.s32.totalorder %s1243_s19, %s993_s29  ;;  %p998_p9 = scmp.lt.u32.totalorder %s1243_s19, %s1292_s7 }
 0x305   : > { %p999_p10 = scmp.lt.u32.totalorder %s997_s13, %s993_s29  ;;  %p1001_p12 = scmp.lt.u32.totalorder %s993_s29, %s1243_s19 }
 0x306   : > { %p995_p7 = pnand %p994_p4, %p1126_p5 }
 0x307   : > { %p1000_p11 = por %p999_p10, %p998_p9 }
 0x308   : > { %p996_p8 = pneg %p995_p7 }
 0x309   : > { %p1002_p13 = por %p1001_p12, %p1000_p11 }
 0x30b   : > { %p1003_p0 = pnand %p1002_p13, %p996_p8 }
 0x30d   : > { %1006 = shalt.err (!%p1003_p0)
}
 0x30e   : > { %902 = dma.vmem_to_hbm [thread:$0]  (%p1126_p5), %s1245_s16, 64, %s1243_s19, %s746_s20  }
 0x30f PF: > { %p908_p1 = scmp.ge.s32.totalorder %s1041_s27, 2  ;;  %s771_s18 = sand.u32 1, %s1029_s24  }
 0x310   : > { %s772_s17 = scalar_lea.sflag [#allocation3], %s771_s18 }
 0x311   : > { %p905_p2 = pnand %p908_p1, %p1130_p6 }
 0x313   : > { %1024 = dma.done.wait (!%p905_p2), %s772_s17, 64  }
 0x314   : > { %1026 = vsyncadd (!%p905_p2), %s772_s17, 4294967232  ;;  %p17_p3 = scmp.ge.s32.totalorder %s1113_s30, 5   ;;  %s1295_s24 = smov %s1033_s25 }
 0x315   : > { %s1296_s25 = smov %s1037_s26  ;;  %s1297_s26 = smov %s1124_s10 }
 0x316   : > { %s1298_s27 = smov %s1113_s30  ;;  %19 = sbr.rel (!%p17_p3) target bundleno = 3 (0x3), region = 83 }
 0x31d   :  { %777 = vsyncpa [#allocation3], 1 }
 0x31e   :  { %779 = vsyncpa [#allocation3 + $0x1], 1 }

</bundles_post_ra>
